<compile_context>
chip_gen: v6e
topology: v6e:2x2x1
jax: 0.10.0
libtpu: 0.0.40
codegen_flags: <defaults>
</compile_context>

<pallas_src>
import functools

import jax
import jax.numpy as jnp
from jax.experimental import pallas as pl
from jax.experimental.pallas import tpu as pltpu


def _round_up(n: int, m: int) -> int:
    return ((n + m - 1) // m) * m


def dqn_kernel(x_ref, w1_ref, b1_ref, w2_ref, b2_ref, q_ref):
    # x_ref : [2, TB]   feature-major batch tile (batch on the lane axis)
    # w1_ref: [64, 2]   fc1 weight, torch layout [out, in]  (VMEM-resident)
    # b1_ref: [64, 1]   fc1 bias as a column vector (broadcasts across lanes)
    # w2_ref: [2, 64]   out weight, torch layout [out, in]  (VMEM-resident)
    # b2_ref: [2, 1]    out bias
    # q_ref : [2, TB]   lane-dense output tile
    x0 = x_ref[0:1, :]                                             # [1, TB]
    x1 = x_ref[1:2, :]                                             # [1, TB]

    # fc1 with K=2: two VPU FMAs instead of a near-empty MXU matmul.
    # h[o, b] = w1[o, 0] * x[0, b] + w1[o, 1] * x[1, b] + b1[o]
    h = w1_ref[:, 0:1] * x0 + w1_ref[:, 1:2] * x1 + b1_ref[...]    # [64, TB]
    h = jnp.maximum(h, 0.0)

    # out layer: lane-dense MXU matmul (K=64), output last dim = TB lanes.
    q = jnp.dot(w2_ref[...], h, preferred_element_type=jnp.float32) + b2_ref[...]
    q_ref[...] = q.astype(q_ref.dtype)


@functools.partial(jax.jit, static_argnames=("block_b",))
def dqn_forward(state, w1, b1, w2, b2, block_b: int = 2048):
    """state: [B, 2] f32 -> Q: [B, 2] f32.

    Weights in PyTorch layout: w1 [64, 2], b1 [64], w2 [2, 64], b2 [2].
    """
    B = state.shape[0]

    # Lane-dense batch tile: a multiple of 128 lanes, capped at block_b.
    tb = min(block_b, _round_up(B, 128))
    tb = _round_up(tb, 128)
    b_pad = _round_up(B, tb)
    grid = (b_pad // tb,)

    # Feature-major layout + pad the batch (lane) axis to a tile multiple.
    x = state.astype(jnp.float32).T                                # [2, B]
    if b_pad != B:
        x = jnp.pad(x, ((0, 0), (0, b_pad - B)))                   # [2, b_pad]

    b1_col = b1.reshape(64, 1).astype(jnp.float32)
    b2_col = b2.reshape(2, 1).astype(jnp.float32)

    q_t = pl.pallas_call(
        dqn_kernel,
        out_shape=jax.ShapeDtypeStruct((2, b_pad), jnp.float32),
        grid=grid,
        in_specs=[
            pl.BlockSpec((2, tb), lambda i: (0, i)),    # x tile (streamed)
            pl.BlockSpec((64, 2), lambda i: (0, 0)),    # w1 (resident)
            pl.BlockSpec((64, 1), lambda i: (0, 0)),    # b1 (resident)
            pl.BlockSpec((2, 64), lambda i: (0, 0)),    # w2 (resident)
            pl.BlockSpec((2, 1), lambda i: (0, 0)),     # b2 (resident)
        ],
        out_specs=pl.BlockSpec((2, tb), lambda i: (0, i)),
        compiler_params=pltpu.CompilerParams(
            dimension_semantics=("parallel",),          # megacore sharding on v7x
        ),
    )(x, w1.astype(jnp.float32), b1_col, w2.astype(jnp.float32), b2_col)

    return q_t[:, :B].T                                            # [B, 2]


def init_params(key):
    """PyTorch nn.Linear default init: U(-1/sqrt(fan_in), 1/sqrt(fan_in)), torch layout."""
    k1, k2, k3, k4 = jax.random.split(key, 4)
    lim1 = 1.0 / jnp.sqrt(2.0)
    lim2 = 1.0 / jnp.sqrt(64.0)
    w1 = jax.random.uniform(k1, (64, 2), jnp.float32, -lim1, lim1)   # [out, in]
    b1 = jax.random.uniform(k2, (64,), jnp.float32, -lim1, lim1)
    w2 = jax.random.uniform(k3, (2, 64), jnp.float32, -lim2, lim2)   # [out, in]
    b2 = jax.random.uniform(k4, (2,), jnp.float32, -lim2, lim2)
    return w1, b1, w2, b2


if __name__ == "__main__":
    key = jax.random.PRNGKey(0)
    pkey, xkey1, xkey2 = jax.random.split(key, 3)
    w1, b1, w2, b2 = init_params(pkey)

    def ref_fn(s):
        return jnp.maximum(s @ w1.T + b1, 0.0) @ w2.T + b2

    # Small RL-style batch (pads up to a single 128-lane tile).
    B = 8
    state = jax.random.normal(xkey1, (B, 2), jnp.float32)
    q = dqn_forward(state, w1, b1, w2, b2)
    jax.block_until_ready(q)
    assert q.shape == (B, 2)
    assert jnp.allclose(q, ref_fn(state), atol=1e-5, rtol=1e-5)

    # Batch exercising padding + a multi-step grid with resident weights.
    B2 = 200
    state2 = jax.random.normal(xkey2, (B2, 2), jnp.float32)
    q2 = dqn_forward(state2, w1, b1, w2, b2, block_b=128)
    jax.block_until_ready(q2)
    assert q2.shape == (B2, 2)
    assert jnp.allclose(q2, ref_fn(state2), atol=1e-5, rtol=1e-5)

    print("KERNEL_OK")
</pallas_src>

<mosaic_0001>
module attributes {stable_mosaic.version = 11 : i64} {
  func.func @dqn_kernel(%arg0: i32, %arg1: memref<2x128xf32, #tpu.memory_space<vmem>>, %arg2: memref<64x2xf32, #tpu.memory_space<vmem>>, %arg3: memref<64x1xf32, #tpu.memory_space<vmem>>, %arg4: memref<2x64xf32, #tpu.memory_space<vmem>>, %arg5: memref<2x1xf32, #tpu.memory_space<vmem>>, %arg6: memref<2x128xf32, #tpu.memory_space<vmem>>) attributes {dimension_semantics = [#tpu.dimension_semantics<parallel>], iteration_bounds = array<i64: 1>, scalar_prefetch = 0 : i64, scratch_operands = 0 : i64, tpu.core_type = #tpu.core_type<tc>, window_params = [{transform_indices = @transform_0, window_bounds = array<i64: 2, 128>}, {pipeline_mode = #tpu.pipeline_mode<synchronous>, transform_indices = @transform_1, window_bounds = array<i64: 64, 2>}, {pipeline_mode = #tpu.pipeline_mode<synchronous>, transform_indices = @transform_2, window_bounds = array<i64: 64, 1>}, {pipeline_mode = #tpu.pipeline_mode<synchronous>, transform_indices = @transform_3, window_bounds = array<i64: 2, 64>}, {pipeline_mode = #tpu.pipeline_mode<synchronous>, transform_indices = @transform_4, window_bounds = array<i64: 2, 1>}, {transform_indices = @transform_5, window_bounds = array<i64: 2, 128>}]} {
    %c0 = arith.constant 0 : index
    %c0_0 = arith.constant 0 : index
    %0 = vector.load %arg1[%c0, %c0_0] : memref<2x128xf32, #tpu.memory_space<vmem>>, vector<1x128xf32>
    %c1 = arith.constant 1 : index
    %c0_1 = arith.constant 0 : index
    %1 = vector.load %arg1[%c1, %c0_1] : memref<2x128xf32, #tpu.memory_space<vmem>>, vector<1x128xf32>
    %c0_2 = arith.constant 0 : index
    %c0_3 = arith.constant 0 : index
    %2 = vector.load %arg2[%c0_2, %c0_3] : memref<64x2xf32, #tpu.memory_space<vmem>>, vector<64x1xf32>
    %3 = vector.broadcast %2 : vector<64x1xf32> to vector<64x128xf32>
    %4 = vector.broadcast %0 : vector<1x128xf32> to vector<64x128xf32>
    %5 = arith.mulf %3, %4 : vector<64x128xf32>
    %c0_4 = arith.constant 0 : index
    %c1_5 = arith.constant 1 : index
    %6 = vector.load %arg2[%c0_4, %c1_5] : memref<64x2xf32, #tpu.memory_space<vmem>>, vector<64x1xf32>
    %7 = vector.broadcast %6 : vector<64x1xf32> to vector<64x128xf32>
    %8 = vector.broadcast %1 : vector<1x128xf32> to vector<64x128xf32>
    %9 = arith.mulf %7, %8 : vector<64x128xf32>
    %10 = arith.addf %5, %9 : vector<64x128xf32>
    %c0_6 = arith.constant 0 : index
    %c0_7 = arith.constant 0 : index
    %11 = vector.load %arg3[%c0_6, %c0_7] : memref<64x1xf32, #tpu.memory_space<vmem>>, vector<64x1xf32>
    %12 = vector.broadcast %11 : vector<64x1xf32> to vector<64x128xf32>
    %13 = arith.addf %10, %12 : vector<64x128xf32>
    %cst = arith.constant 0.000000e+00 : f32
    %14 = vector.broadcast %cst : f32 to vector<64x128xf32>
    %15 = arith.maximumf %13, %14 : vector<64x128xf32>
    %c0_8 = arith.constant 0 : index
    %c0_9 = arith.constant 0 : index
    %16 = vector.load %arg4[%c0_8, %c0_9] : memref<2x64xf32, #tpu.memory_space<vmem>>, vector<2x64xf32>
    %cst_10 = arith.constant dense<0.000000e+00> : vector<2x128xf32>
    %17 = tpu.matmul %16, %15, %cst_10 {dimension_numbers = #tpu.dot_dimension_numbers<[1], [0], [0], [1], [0, 0, 1, 1], [], []>} : vector<2x64xf32>, vector<64x128xf32>, vector<2x128xf32> -> vector<2x128xf32>
    %c0_11 = arith.constant 0 : index
    %c0_12 = arith.constant 0 : index
    %18 = vector.load %arg5[%c0_11, %c0_12] : memref<2x1xf32, #tpu.memory_space<vmem>>, vector<2x1xf32>
    %19 = vector.broadcast %18 : vector<2x1xf32> to vector<2x128xf32>
    %20 = arith.addf %17, %19 : vector<2x128xf32>
    %c0_13 = arith.constant 0 : index
    %c0_14 = arith.constant 0 : index
    %21 = vector.load %arg6[%c0_13, %c0_14] : memref<2x128xf32, #tpu.memory_space<vmem>>, vector<2x128xf32>
    tpu.vector_store %arg6[%c0_13, %c0_14], %20 {strides = array<i32>} : memref<2x128xf32, #tpu.memory_space<vmem>>, vector<2x128xf32>,
    return
  }
  func.func @transform_0(%arg0: i32) -> (i32, i32) {
    %c0_i32 = arith.constant 0 : i32
    %c0_i32_0 = arith.constant 0 : i32
    return %c0_i32, %arg0 : i32, i32
  }
  func.func @transform_1(%arg0: i32) -> (i32, i32) {
    %c0_i32 = arith.constant 0 : i32
    %c0_i32_0 = arith.constant 0 : i32
    %c0_i32_1 = arith.constant 0 : i32
    return %c0_i32, %c0_i32_0 : i32, i32
  }
  func.func @transform_2(%arg0: i32) -> (i32, i32) {
    %c0_i32 = arith.constant 0 : i32
    %c0_i32_0 = arith.constant 0 : i32
    %c0_i32_1 = arith.constant 0 : i32
    return %c0_i32, %c0_i32_0 : i32, i32
  }
  func.func @transform_3(%arg0: i32) -> (i32, i32) {
    %c0_i32 = arith.constant 0 : i32
    %c0_i32_0 = arith.constant 0 : i32
    %c0_i32_1 = arith.constant 0 : i32
    return %c0_i32, %c0_i32_0 : i32, i32
  }
  func.func @transform_4(%arg0: i32) -> (i32, i32) {
    %c0_i32 = arith.constant 0 : i32
    %c0_i32_0 = arith.constant 0 : i32
    %c0_i32_1 = arith.constant 0 : i32
    return %c0_i32, %c0_i32_0 : i32, i32
  }
  func.func @transform_5(%arg0: i32) -> (i32, i32) {
    %c0_i32 = arith.constant 0 : i32
    %c0_i32_0 = arith.constant 0 : i32
    return %c0_i32, %arg0 : i32, i32
  }
}

</mosaic_0001>

<bundles_post_ra>
// kernel: dqn_forward.1
= control target key start
LH: loop header
LB: loop body
LE: loop exit
PB: predicated region body
PF: predicated region fallthrough
CT: control target
= control target key end

     0   :  { %v330_v0 = vmov 1   ;;  %v331_v1 = vmov 0   ;;  %v332_v9 = vmov 0.0   ;;  %vm333_vm0 = vmmov 0   ;;  %s436_s1 = inlined_call_operand.vmem [shape: f32[64,2], index: 1, kind: input, shape index: {}]   ;;  %s437_s2 = inlined_call_operand.vmem [shape: f32[64,1], index: 2, kind: input, shape index: {}]   ;;  %s438_s4 = inlined_call_operand.vmem [shape: f32[2,1], index: 4, kind: input, shape index: {}]   ;;  %s439_s0 = inlined_call_operand.vmem [shape: f32[2,128], index: 0, kind: input, shape index: {}]   ;;  %s440_s3 = inlined_call_operand.vmem [shape: f32[2,64], index: 3, kind: input, shape index: {}]   ;;  %s441_s5 = inlined_call_operand.vmem [shape: f32[2,128], index: 5, kind: output, shape index: {}]  }
   0x1   :  { %319 = vset.pattern.permute.xlu0 %v330_v0  ;;  %320 = vset.pattern.permute.xlu1 %v331_v1  ;;  %v29_v2 = vld [vmem:[%s436_s1 + $0x38] sm:$0xff]  ;;  %v28_v3 = vld [vmem:[%s436_s1 + $0x30] sm:$0xff]  ;;  %v27_v4 = vld [vmem:[%s436_s1 + $0x28] sm:$0xff]  ;;  %vm205_vm1 = vcmask 523264  }
   0x2   :  { %111 = vperm.xlu0 %319, %v29_v2   ;;  %62 = vperm.xlu1 %320, %v28_v3   ;;  %v24_v5 = vld [vmem:[%s436_s1 + $0x10] sm:$0xff]  ;;  %v23_v6 = vld [vmem:[%s436_s1 + $0x8] sm:$0xff]  ;;  %v141_v7 = vld [vmem:[%s437_s2 + $0x38] sm:$0xff] }
   0x3   :  { %v26_v8 = vld [vmem:[%s436_s1 + $0x20] sm:$0xff]  ;;  %296 = vmatprep.subr.mxu0 %v332_v9  ;;  %v140_v10 = vld [vmem:[%s437_s2 + $0x30] sm:$0xff]  ;;  %v25_v11 = vld [vmem:[%s436_s1 + $0x18] sm:$0xff]  ;;  %312 = vmatprep.mubr.msk.f32.mxu0 %vm333_vm0, %v332_v9 }
   0x4   :  { %v139_v12 = vld [vmem:[%s437_s2 + $0x28] sm:$0xff]  ;;  %v22_v13 = vld [vmem:[%s436_s1] sm:$0xff]  ;;  %v137_v17 = vld [vmem:[%s437_s2 + $0x18] sm:$0xff] }
   0x5   :  { %v135_v14 = vld [vmem:[%s437_s2 + $0x8] sm:$0xff]  ;;  %v138_v15 = vld [vmem:[%s437_s2 + $0x20] sm:$0xff]  ;;  %v136_v18 = vld [vmem:[%s437_s2 + $0x10] sm:$0xff] }
   0x6   :  { %321 = vset.pattern.permute.xlu1 %v330_v0  ;;  %103 = vperm.xlu0 %319, %v27_v4   ;;  %v199_v16 = vld [vmem:[%s438_s4] sm:$0x3] }
   0x7   :  { %107 = vperm.xlu1 %321, %v28_v3   ;;  %v134_v19 = vld [vmem:[%s437_s2] sm:$0xff] }
   0x8   :  { %v285_v28 = vld [vmem:[%s439_s0 + $0x1] ss:$0 sm:$0xff]  ;;  %v284_v30 = vld [vmem:[%s439_s0] ss:$0 sm:$0xff] }
   0xa   :  { %91 = vperm.xlu0 %319, %v24_v5  }
   0xb   :  { %322 = vset.pattern.permute.xlu1 %v331_v1 }
   0xc   :  { %57 = vperm.xlu1 %322, %v27_v4  }
   0xe   :  { %87 = vperm.xlu0 %319, %v23_v6  }
  0x10   :  { %179 = vperm.xlu1 %322, %v141_v7  }
  0x12   :  { %327 = vset.pattern.permute.xlu0 %v331_v1 }
  0x13   :  { %67 = vperm.xlu0 %327, %v29_v2  }
  0x14   :  { %323 = vset.pattern.permute.xlu1 %v330_v0 }
  0x15   :  { %99 = vperm.xlu1 %323, %v26_v8  }
  0x17   :  { %52 = vperm.xlu0 %327, %v26_v8  }
  0x19   :  { %324 = vset.pattern.permute.xlu1 %v331_v1 }
  0x1a   :  { %174 = vperm.xlu1 %324, %v140_v10  }
  0x1b   :  { %47 = vperm.xlu0 %327, %v25_v11  }
  0x1e   :  { %325 = vset.pattern.permute.xlu1 %v330_v0 }
  0x1f   :  { %95 = vperm.xlu1 %325, %v25_v11   ;;  %169 = vperm.xlu0 %327, %v139_v12  }
  0x23   :  { %326 = vset.pattern.permute.xlu1 %v331_v1  ;;  %32 = vperm.xlu0 %327, %v22_v13  }
  0x24   :  { %42 = vperm.xlu1 %326, %v24_v5  }
  0x27   :  { %149 = vperm.xlu0 %327, %v135_v14  }
  0x28   :  { %164 = vperm.xlu1 %326, %v138_v15  }
  0x2b   :  { %202 = vperm.xlu0 %327, %v199_v16  }
  0x2c   :  { %37 = vperm.xlu1 %326, %v23_v6  }
  0x30   :  { %159 = vperm.xlu1 %326, %v137_v17  }
  0x34   :  { %328 = vset.pattern.permute.xlu1 %v330_v0 }
  0x35   :  { %83 = vperm.xlu1 %328, %v22_v13  }
  0x39   :  { %329 = vset.pattern.permute.xlu1 %v331_v1 }
  0x3a   :  { %154 = vperm.xlu1 %329, %v136_v18  }
  0x3e   :  { %144 = vperm.xlu1 %329, %v134_v19  }
  0x7d   :  { %v63_v20 = vpop.permute.xlu1 %62  ;;  %v112_v21 = vpop.permute.xlu0 %111 }
  0x7e   :  { %v125_v29 = vmul.f32 %v285_v28, %v112_v21  ;;  %v80_v36 = vmul.f32 %v284_v30, %v63_v20 }
  0x81   :  { %v104_v22 = vpop.permute.xlu0 %103 }
  0x82   :  { %v108_v23 = vpop.permute.xlu1 %107  ;;  %v123_v40 = vmul.f32 %v285_v28, %v104_v22 }
  0x83   :  { %v124_v33 = vmul.f32 %v285_v28, %v108_v23  ;;  %v198_v23 = vld [vmem:[%s440_s3] sm:$0x3] }
  0x85   :  { %v92_v24 = vpop.permute.xlu0 %91  ;;  %v132_v39 = vadd.f32 %v124_v33, %v80_v36 }
  0x86   :  { %v120_v7 = vmul.f32 %v285_v28, %v92_v24 }
  0x87   :  { %v58_v25 = vpop.permute.xlu1 %57 }
  0x88   :  { %v79_v41 = vmul.f32 %v284_v30, %v58_v25 }
  0x89   :  { %v88_v26 = vpop.permute.xlu0 %87 }
  0x8a   :  { %v131_v47 = vadd.f32 %v123_v40, %v79_v41  ;;  %v119_v4 = vmul.f32 %v285_v28, %v88_v26 }
  0x8b   :  { %v180_v27 = vpop.permute.xlu1 %179 }
  0x8e   :  { %v68_v31 = vpop.permute.xlu0 %67 }
  0x8f   :  { %v81_v32 = vmul.f32 %v284_v30, %v68_v31 }
  0x90   :  { %v100_v34 = vpop.permute.xlu1 %99 }
  0x91   :  { %v133_v35 = vadd.f32 %v125_v29, %v81_v32  ;;  %v122_v54 = vmul.f32 %v285_v28, %v100_v34 }
  0x92   :  { %v53_v37 = vpop.permute.xlu0 %52 }
  0x93   :  { %v189_v38 = vadd.f32 %v180_v27, %v133_v35  ;;  %v78_v52 = vmul.f32 %v284_v30, %v53_v37 }
  0x95   :  { %v175_v42 = vpop.permute.xlu1 %174  ;;  %v197_v43 = vmax.f32 %v189_v38, 0.0  ;;  %v130_v55 = vadd.f32 %v122_v54, %v78_v52 }
  0x96   :  { %v188_v44 = vadd.f32 %v175_v42, %v132_v39  ;;  %v48_v45 = vpop.permute.xlu0 %47 }
  0x97   :  { %297 = vmatpush3.msra.mxu0 %v197_v43  ;;  %v77_v58 = vmul.f32 %v284_v30, %v48_v45 }
  0x98   :  { %v196_v46 = vmax.f32 %v188_v44, 0.0  ;;  %298 = vmatprep.subr.mxu0 %v332_v9 }
  0x9a   :  { %v96_v48 = vpop.permute.xlu1 %95  ;;  %v170_v49 = vpop.permute.xlu0 %169  ;;  %299 = vmatpush3.msra.mxu0 %v196_v46 }
  0x9b   :  { %v187_v50 = vadd.f32 %v170_v49, %v131_v47  ;;  %300 = vmatprep.subr.mxu0 %v332_v9  ;;  %v121_v59 = vmul.f32 %v285_v28, %v96_v48 }
  0x9d   :  { %v195_v51 = vmax.f32 %v187_v50, 0.0  ;;  %v129_v62 = vadd.f32 %v121_v59, %v77_v58 }
  0x9e   :  { %v33_v3 = vpop.permute.xlu0 %32 }
  0x9f   :  { %v43_v53 = vpop.permute.xlu1 %42  ;;  %301 = vmatpush3.msra.mxu0 %v195_v51  ;;  %v74_v14 = vmul.f32 %v284_v30, %v33_v3 }
  0xa0   :  { %302 = vmatprep.subr.mxu0 %v332_v9  ;;  %v76_v5 = vmul.f32 %v284_v30, %v43_v53 }
  0xa2   :  { %v128_v11 = vadd.f32 %v120_v7, %v76_v5  ;;  %v150_v12 = vpop.permute.xlu0 %149 }
  0xa3   :  { %v165_v56 = vpop.permute.xlu1 %164 }
  0xa4   :  { %v186_v57 = vadd.f32 %v165_v56, %v130_v55 }
  0xa6   :  { %v194_v60 = vmax.f32 %v186_v57, 0.0  ;;  %v203_v24 = vpop.permute.xlu0 %202 }
  0xa7   :  { %v38_v61 = vpop.permute.xlu1 %37 }
  0xa8   :  { %303 = vmatpush3.msra.mxu0 %v194_v60  ;;  %v75_v1 = vmul.f32 %v284_v30, %v38_v61 }
  0xa9   :  { %304 = vmatprep.subr.mxu0 %v332_v9 }
  0xaa   :  { %v127_v8 = vadd.f32 %v119_v4, %v75_v1 }
  0xab   :  { %v160_v63 = vpop.permute.xlu1 %159 }
  0xac   :  { %v185_v0 = vadd.f32 %v160_v63, %v129_v62  ;;  %v183_v16 = vadd.f32 %v150_v12, %v127_v8 }
  0xae   :  { %v193_v2 = vmax.f32 %v185_v0, 0.0  ;;  %v191_v21 = vmax.f32 %v183_v16, 0.0 }
  0xb0   :  { %v84_v6 = vpop.permute.xlu1 %83  ;;  %305 = vmatpush3.msra.mxu0 %v193_v2 }
  0xb1   :  { %306 = vmatprep.subr.mxu0 %v332_v9  ;;  %v118_v10 = vmul.f32 %v285_v28, %v84_v6 }
  0xb3   :  { %v126_v18 = vadd.f32 %v118_v10, %v74_v14 }
  0xb5   :  { %v155_v13 = vpop.permute.xlu1 %154 }
  0xb6   :  { %v184_v15 = vadd.f32 %v155_v13, %v128_v11 }
  0xb8   :  { %v192_v17 = vmax.f32 %v184_v15, 0.0 }
  0xb9   :  { %v145_v19 = vpop.permute.xlu1 %144 }
  0xba   :  { %v182_v20 = vadd.f32 %v145_v19, %v126_v18  ;;  %307 = vmatpush3.msra.mxu0 %v192_v17 }
  0xbb   :  { %308 = vmatprep.subr.mxu0 %v332_v9 }
  0xbc   :  { %v190_v22 = vmax.f32 %v182_v20, 0.0  ;;  %309 = vmatpush3.msra.mxu0 %v191_v21 }
  0xbd   :  { %310 = vmatprep.subr.mxu0 %v332_v9 }
  0xbe   :  { %311 = vmatpush3.msra.mxu0 %v190_v22 }
  0xbf   :  { %313 = vmatmul.mubr.msk.f32.vlgmr.msra.gmra.mxu0 %vm205_vm1, %v198_v23 }
 0x17f   :  { %v275_v25 = vpop.f32.mrf.mxu0 }
 0x180   :  { %v276_v26 = vadd.f32 %v275_v25, %v203_v24 }
 0x181   :  { %v314_v27 = vpop.f32.mrf.mxu0 }
 0x182   :  { %279 = vst [vmem:[%s441_s5] sm:$0x3] %v276_v26 }

</bundles_post_ra>
